<compile_context>
chip_gen: v7x
topology: tpu7x:2x2x1
jax: 0.10.0
libtpu: 0.0.40
codegen_flags: <defaults>
</compile_context>

<pallas_src>
import functools

import numpy as np
import jax
import jax.numpy as jnp
from jax.experimental import pallas as pl
from jax.experimental.pallas import tpu as pltpu

# SH constants from the PyTorch module.
_C1 = 0.429043
_C2 = 0.511664
_C3 = 0.743125
_C4 = 0.886227
_C5 = 0.247708


def _sh_coefficients(lighting, batch):
    """Fold SH basis constants + lighting (B,9,3) into per-(batch, colour)
    polynomial coefficients so that

      shading_sh = a0 + a1*nx + a2*ny + a3*nz
                   + a4*nx*ny + a5*ny*nz + a6*nz*nx
                   + a7*nx^2  + a8*ny^2  + a9*nz^2

    Returns a (B, 30) float32 table laid out as coeff[b, c*10 + j]."""
    L = jnp.reshape(lighting, (batch, 9, 3)).astype(jnp.float32)
    a0 = _C4 * L[:, 0, :] - _C5 * L[:, 6, :]
    a1 = 2.0 * _C2 * L[:, 3, :]          # nx
    a2 = 2.0 * _C2 * L[:, 1, :]          # ny
    a3 = 2.0 * _C2 * L[:, 2, :]          # nz
    a4 = 2.0 * _C1 * L[:, 4, :]          # nx*ny
    a5 = 2.0 * _C1 * L[:, 5, :]          # ny*nz
    a6 = 2.0 * _C1 * L[:, 7, :]          # nz*nx
    a7 = _C1 * L[:, 8, :]                # nx^2
    a8 = -_C1 * L[:, 8, :]               # ny^2
    a9 = _C3 * L[:, 6, :]                # nz^2
    coeff = jnp.stack([a0, a1, a2, a3, a4, a5, a6, a7, a8, a9], axis=-1)  # (B,3,10)
    return coeff.reshape(batch, 30)


def _choose_rows(H, W, target_bytes=1_572_864):
    """Largest row-tile TH that (a) divides H, (b) is a multiple of 8 (or == H),
    and (c) keeps one f32 channel plane block near ~1.5 MiB."""
    rows = max(8, target_bytes // (4 * W))
    if rows >= H:
        return H
    th = (min(rows, H) // 8) * 8
    while th >= 8:
        if H % th == 0:
            return th
        th -= 8
    return H  # fallback: whole plane (block == full dim is always legal)


def _render_loss_kernel(shading_ref, normal_ref, mask_ref, coeff_ref,
                        sq_ref, cnt_ref, *, mask_channels):
    """One (batch, row-tile) block: decode+normalise normals, evaluate the SH
    polynomial, accumulate masked squared error and mask count."""
    b = pl.program_id(0)
    s = pl.program_id(1)
    f32 = jnp.float32

    # --- normal: undo [0,1] encoding and L2-normalise over the channel dim ---
    nx = (normal_ref[0].astype(f32) - 0.5) * 2.0
    ny = (normal_ref[1].astype(f32) - 0.5) * 2.0
    nz = (normal_ref[2].astype(f32) - 0.5) * 2.0
    inv_n = 1.0 / (jnp.sqrt(nx * nx + ny * ny + nz * nz) + 1e-6)
    nx = nx * inv_n
    ny = ny * inv_n
    nz = nz * inv_n

    # quadratic terms, computed once and shared by all three colour channels
    nxny = nx * ny
    nynz = ny * nz
    nznx = nz * nx
    nx2 = nx * nx
    ny2 = ny * ny
    nz2 = nz * nz

    # --- SH-rendered shading per colour channel, masked squared error ---
    msq = None
    for c in range(3):
        a = [coeff_ref[b, c * 10 + j] for j in range(10)]  # scalars from SMEM
        pred = (a[0]
                + a[1] * nx + a[2] * ny + a[3] * nz
                + a[4] * nxny + a[5] * nynz + a[6] * nznx
                + a[7] * nx2 + a[8] * ny2 + a[9] * nz2)
        d = shading_ref[c].astype(f32) - pred
        d2 = d * d
        if mask_channels == 3:
            d2 = d2 * mask_ref[c].astype(f32)
        msq = d2 if msq is None else msq + d2
    if mask_channels == 1:
        # a 1-channel mask is shared by all 3 colour channels
        msq = msq * mask_ref[0].astype(f32)

    sq_part = jnp.reshape(jnp.sum(msq), (1, 1))

    # mask count (PyTorch repeats a 1-channel mask to 3 channels before summing)
    cnt = jnp.sum(mask_ref[...].astype(f32))
    if mask_channels == 1:
        cnt = cnt * 3.0
    cnt_part = jnp.reshape(cnt, (1, 1))

    # --- global accumulation into the resident (1,1) output blocks ---
    @pl.when(jnp.logical_and(b == 0, s == 0))
    def _():
        sq_ref[...] = jnp.zeros_like(sq_ref)
        cnt_ref[...] = jnp.zeros_like(cnt_ref)

    sq_ref[...] += sq_part
    cnt_ref[...] += cnt_part


def sh_render_loss(shading, normal, lighting, mask, weight=1.0):
    """Fused equivalent of SHRenderLoss.forward. Returns a scalar (f32)."""
    B, C, H, W = shading.shape
    assert C == 3 and normal.shape == (B, 3, H, W)
    Cm = mask.shape[1]
    assert Cm in (1, 3) and mask.shape == (B, Cm, H, W)

    coeff = _sh_coefficients(lighting, B)        # (B, 30) f32, lives in SMEM
    TH = _choose_rows(H, W)
    NS = H // TH

    kernel = functools.partial(_render_loss_kernel, mask_channels=Cm)

    def img_spec(nchan):
        return pl.BlockSpec((None, nchan, TH, W), lambda b, s: (b, 0, s, 0))

    out_spec = pl.BlockSpec((1, 1), lambda b, s: (0, 0))

    sq, cnt = pl.pallas_call(
        kernel,
        out_shape=(jax.ShapeDtypeStruct((1, 1), jnp.float32),
                   jax.ShapeDtypeStruct((1, 1), jnp.float32)),
        grid=(B, NS),
        in_specs=[img_spec(3),                                    # shading
                  img_spec(3),                                    # normal
                  img_spec(Cm),                                   # mask
                  pl.BlockSpec(memory_space=pltpu.MemorySpace.SMEM)],  # coeff
        out_specs=(out_spec, out_spec),
        compiler_params=pltpu.CompilerParams(
            # The (1,1) outputs are resident accumulators revisited on every
            # grid step, so both axes must be sequential ("arbitrary").
            # (For v7x megacore one could emit per-batch partials instead and
            # mark the batch axis "parallel"; total work here is tiny.)
            dimension_semantics=("arbitrary", "arbitrary"),
            vmem_limit_bytes=32 * 1024 * 1024,
        ),
    )(shading, normal, mask, coeff)

    return weight * (sq[0, 0] / cnt[0, 0])


def _reference_loss(shading, normal, lighting, mask, weight=1.0):
    """Pure-JAX transcription of SHRenderLoss.forward (for validation)."""
    B = shading.shape[0]
    n = (normal - 0.5) * 2.0
    norm = jnp.sqrt(jnp.sum(n * n, axis=1, keepdims=True)) + 1e-6
    n = n / norm
    if mask.shape[1] == 1:
        mask = jnp.tile(mask, (1, 3, 1, 1))
    maskr = jnp.transpose(mask, (0, 2, 3, 1)).reshape(B, -1, 3)
    sh = jnp.transpose(shading, (0, 2, 3, 1)).reshape(B, -1, 3)
    nr = jnp.transpose(n, (0, 2, 3, 1)).reshape(B, -1, 3)
    L = jnp.reshape(lighting, (B, 9, 3))
    ones = jnp.ones(nr.shape[:2], jnp.float32)
    BN = jnp.stack([_C4 * ones,
                    2 * _C2 * nr[..., 1], 2 * _C2 * nr[..., 2], 2 * _C2 * nr[..., 0],
                    2 * _C1 * nr[..., 0] * nr[..., 1],
                    2 * _C1 * nr[..., 1] * nr[..., 2],
                    _C3 * nr[..., 2] ** 2 - _C5,
                    2 * _C1 * nr[..., 2] * nr[..., 0],
                    _C1 * (nr[..., 0] ** 2 - nr[..., 1] ** 2)], axis=-1)
    sh_sh = jnp.matmul(BN, L)
    count = jnp.sum(maskr)
    return weight * jnp.sum((sh - sh_sh) ** 2 * maskr) / count


if __name__ == "__main__":
    key = jax.random.PRNGKey(0)
    k1, k2, k3, k4 = jax.random.split(key, 4)
    B, H, W = 2, 16, 16
    shading = jax.random.uniform(k1, (B, 3, H, W), dtype=jnp.float32)
    normal = jax.random.uniform(k2, (B, 3, H, W), dtype=jnp.float32)
    lighting = jax.random.normal(k3, (B, 9, 3), dtype=jnp.float32)
    mask = (jax.random.uniform(k4, (B, 1, H, W)) > 0.3).astype(jnp.float32)

    # 1-channel mask path (exercises the repeat-to-3-channels semantics)
    loss1 = sh_render_loss(shading, normal, lighting, mask, weight=1.0)
    jax.block_until_ready(loss1)

    # 3-channel mask path
    mask3 = jnp.tile(mask, (1, 3, 1, 1))
    loss3 = sh_render_loss(shading, normal, lighting, mask3, weight=1.0)
    jax.block_until_ready(loss3)

    ref = _reference_loss(shading, normal, lighting, mask, weight=1.0)
    np.testing.assert_allclose(np.asarray(loss1), np.asarray(ref), rtol=1e-4, atol=1e-5)
    np.testing.assert_allclose(np.asarray(loss3), np.asarray(ref), rtol=1e-4, atol=1e-5)
    print("KERNEL_OK")
</pallas_src>

<mosaic_0001>
module attributes {stable_mosaic.version = 11 : i64} {
  func.func @_render_loss_kernel(%arg0: i32, %arg1: i32, %arg2: memref<1x3x16x16xf32, #tpu.memory_space<vmem>>, %arg3: memref<1x3x16x16xf32, #tpu.memory_space<vmem>>, %arg4: memref<1x1x16x16xf32, #tpu.memory_space<vmem>>, %arg5: memref<2x30xf32, #tpu.memory_space<smem>>, %arg6: memref<1x1xf32, #tpu.memory_space<vmem>>, %arg7: memref<1x1xf32, #tpu.memory_space<vmem>>) attributes {dimension_semantics = [#tpu.dimension_semantics<arbitrary>, #tpu.dimension_semantics<arbitrary>], iteration_bounds = array<i64: 2, 1>, scalar_prefetch = 0 : i64, scratch_operands = 0 : i64, tpu.core_type = #tpu.core_type<tc>, window_params = [{transform_indices = @transform_0, window_bounds = array<i64: 1, 3, 16, 16>}, {transform_indices = @transform_1, window_bounds = array<i64: 1, 3, 16, 16>}, {transform_indices = @transform_2, window_bounds = array<i64: 1, 1, 16, 16>}, {transform_indices = @transform_3, window_bounds = array<i64: 2, 30>}, {pipeline_mode = #tpu.pipeline_mode<synchronous>, transform_indices = @transform_4, window_bounds = array<i64: 1, 1>}, {pipeline_mode = #tpu.pipeline_mode<synchronous>, transform_indices = @transform_5, window_bounds = array<i64: 1, 1>}]} {
    %c0 = arith.constant 0 : index
    %c0_0 = arith.constant 0 : index
    %c0_1 = arith.constant 0 : index
    %c0_2 = arith.constant 0 : index
    %0 = vector.load %arg3[%c0, %c0_0, %c0_1, %c0_2] : memref<1x3x16x16xf32, #tpu.memory_space<vmem>>, vector<1x1x16x16xf32>
    %1 = vector.shape_cast %0 : vector<1x1x16x16xf32> to vector<16x16xf32>
    %cst = arith.constant 5.000000e-01 : f32
    %2 = vector.broadcast %cst : f32 to vector<16x16xf32>
    %3 = arith.subf %1, %2 : vector<16x16xf32>
    %cst_3 = arith.constant 2.000000e+00 : f32
    %4 = vector.broadcast %cst_3 : f32 to vector<16x16xf32>
    %5 = arith.mulf %3, %4 : vector<16x16xf32>
    %c0_4 = arith.constant 0 : index
    %c1 = arith.constant 1 : index
    %c0_5 = arith.constant 0 : index
    %c0_6 = arith.constant 0 : index
    %6 = vector.load %arg3[%c0_4, %c1, %c0_5, %c0_6] : memref<1x3x16x16xf32, #tpu.memory_space<vmem>>, vector<1x1x16x16xf32>
    %7 = vector.shape_cast %6 : vector<1x1x16x16xf32> to vector<16x16xf32>
    %cst_7 = arith.constant 5.000000e-01 : f32
    %8 = vector.broadcast %cst_7 : f32 to vector<16x16xf32>
    %9 = arith.subf %7, %8 : vector<16x16xf32>
    %cst_8 = arith.constant 2.000000e+00 : f32
    %10 = vector.broadcast %cst_8 : f32 to vector<16x16xf32>
    %11 = arith.mulf %9, %10 : vector<16x16xf32>
    %c0_9 = arith.constant 0 : index
    %c2 = arith.constant 2 : index
    %c0_10 = arith.constant 0 : index
    %c0_11 = arith.constant 0 : index
    %12 = vector.load %arg3[%c0_9, %c2, %c0_10, %c0_11] : memref<1x3x16x16xf32, #tpu.memory_space<vmem>>, vector<1x1x16x16xf32>
    %13 = vector.shape_cast %12 : vector<1x1x16x16xf32> to vector<16x16xf32>
    %cst_12 = arith.constant 5.000000e-01 : f32
    %14 = vector.broadcast %cst_12 : f32 to vector<16x16xf32>
    %15 = arith.subf %13, %14 : vector<16x16xf32>
    %cst_13 = arith.constant 2.000000e+00 : f32
    %16 = vector.broadcast %cst_13 : f32 to vector<16x16xf32>
    %17 = arith.mulf %15, %16 : vector<16x16xf32>
    %18 = arith.mulf %5, %5 : vector<16x16xf32>
    %19 = arith.mulf %11, %11 : vector<16x16xf32>
    %20 = arith.addf %18, %19 : vector<16x16xf32>
    %21 = arith.mulf %17, %17 : vector<16x16xf32>
    %22 = arith.addf %20, %21 : vector<16x16xf32>
    %23 = math.sqrt %22 : vector<16x16xf32>
    %cst_14 = arith.constant 9.99999997E-7 : f32
    %24 = vector.broadcast %cst_14 : f32 to vector<16x16xf32>
    %25 = arith.addf %23, %24 : vector<16x16xf32>
    %cst_15 = arith.constant 1.000000e+00 : f32
    %26 = vector.broadcast %cst_15 : f32 to vector<16x16xf32>
    %27 = arith.divf %26, %25 : vector<16x16xf32>
    %28 = arith.mulf %5, %27 : vector<16x16xf32>
    %29 = arith.mulf %11, %27 : vector<16x16xf32>
    %30 = arith.mulf %17, %27 : vector<16x16xf32>
    %31 = arith.mulf %28, %29 : vector<16x16xf32>
    %32 = arith.mulf %29, %30 : vector<16x16xf32>
    %33 = arith.mulf %30, %28 : vector<16x16xf32>
    %34 = arith.mulf %28, %28 : vector<16x16xf32>
    %35 = arith.mulf %29, %29 : vector<16x16xf32>
    %36 = arith.mulf %30, %30 : vector<16x16xf32>
    %37 = arith.index_cast %arg0 : i32 to index
    %c0_16 = arith.constant 0 : index
    %38 = memref.load %arg5[%37, %c0_16] : memref<2x30xf32, #tpu.memory_space<smem>>
    %39 = arith.index_cast %arg0 : i32 to index
    %c1_17 = arith.constant 1 : index
    %40 = memref.load %arg5[%39, %c1_17] : memref<2x30xf32, #tpu.memory_space<smem>>
    %41 = arith.index_cast %arg0 : i32 to index
    %c2_18 = arith.constant 2 : index
    %42 = memref.load %arg5[%41, %c2_18] : memref<2x30xf32, #tpu.memory_space<smem>>
    %43 = arith.index_cast %arg0 : i32 to index
    %c3 = arith.constant 3 : index
    %44 = memref.load %arg5[%43, %c3] : memref<2x30xf32, #tpu.memory_space<smem>>
    %45 = arith.index_cast %arg0 : i32 to index
    %c4 = arith.constant 4 : index
    %46 = memref.load %arg5[%45, %c4] : memref<2x30xf32, #tpu.memory_space<smem>>
    %47 = arith.index_cast %arg0 : i32 to index
    %c5 = arith.constant 5 : index
    %48 = memref.load %arg5[%47, %c5] : memref<2x30xf32, #tpu.memory_space<smem>>
    %49 = arith.index_cast %arg0 : i32 to index
    %c6 = arith.constant 6 : index
    %50 = memref.load %arg5[%49, %c6] : memref<2x30xf32, #tpu.memory_space<smem>>
    %51 = arith.index_cast %arg0 : i32 to index
    %c7 = arith.constant 7 : index
    %52 = memref.load %arg5[%51, %c7] : memref<2x30xf32, #tpu.memory_space<smem>>
    %53 = arith.index_cast %arg0 : i32 to index
    %c8 = arith.constant 8 : index
    %54 = memref.load %arg5[%53, %c8] : memref<2x30xf32, #tpu.memory_space<smem>>
    %55 = arith.index_cast %arg0 : i32 to index
    %c9 = arith.constant 9 : index
    %56 = memref.load %arg5[%55, %c9] : memref<2x30xf32, #tpu.memory_space<smem>>
    %57 = vector.broadcast %40 : f32 to vector<16x16xf32>
    %58 = arith.mulf %57, %28 : vector<16x16xf32>
    %59 = vector.broadcast %38 : f32 to vector<16x16xf32>
    %60 = arith.addf %59, %58 : vector<16x16xf32>
    %61 = vector.broadcast %42 : f32 to vector<16x16xf32>
    %62 = arith.mulf %61, %29 : vector<16x16xf32>
    %63 = arith.addf %60, %62 : vector<16x16xf32>
    %64 = vector.broadcast %44 : f32 to vector<16x16xf32>
    %65 = arith.mulf %64, %30 : vector<16x16xf32>
    %66 = arith.addf %63, %65 : vector<16x16xf32>
    %67 = vector.broadcast %46 : f32 to vector<16x16xf32>
    %68 = arith.mulf %67, %31 : vector<16x16xf32>
    %69 = arith.addf %66, %68 : vector<16x16xf32>
    %70 = vector.broadcast %48 : f32 to vector<16x16xf32>
    %71 = arith.mulf %70, %32 : vector<16x16xf32>
    %72 = arith.addf %69, %71 : vector<16x16xf32>
    %73 = vector.broadcast %50 : f32 to vector<16x16xf32>
    %74 = arith.mulf %73, %33 : vector<16x16xf32>
    %75 = arith.addf %72, %74 : vector<16x16xf32>
    %76 = vector.broadcast %52 : f32 to vector<16x16xf32>
    %77 = arith.mulf %76, %34 : vector<16x16xf32>
    %78 = arith.addf %75, %77 : vector<16x16xf32>
    %79 = vector.broadcast %54 : f32 to vector<16x16xf32>
    %80 = arith.mulf %79, %35 : vector<16x16xf32>
    %81 = arith.addf %78, %80 : vector<16x16xf32>
    %82 = vector.broadcast %56 : f32 to vector<16x16xf32>
    %83 = arith.mulf %82, %36 : vector<16x16xf32>
    %84 = arith.addf %81, %83 : vector<16x16xf32>
    %c0_19 = arith.constant 0 : index
    %c0_20 = arith.constant 0 : index
    %c0_21 = arith.constant 0 : index
    %c0_22 = arith.constant 0 : index
    %85 = vector.load %arg2[%c0_19, %c0_20, %c0_21, %c0_22] : memref<1x3x16x16xf32, #tpu.memory_space<vmem>>, vector<1x1x16x16xf32>
    %86 = vector.shape_cast %85 : vector<1x1x16x16xf32> to vector<16x16xf32>
    %87 = arith.subf %86, %84 : vector<16x16xf32>
    %88 = arith.mulf %87, %87 : vector<16x16xf32>
    %89 = arith.index_cast %arg0 : i32 to index
    %c10 = arith.constant 10 : index
    %90 = memref.load %arg5[%89, %c10] : memref<2x30xf32, #tpu.memory_space<smem>>
    %91 = arith.index_cast %arg0 : i32 to index
    %c11 = arith.constant 11 : index
    %92 = memref.load %arg5[%91, %c11] : memref<2x30xf32, #tpu.memory_space<smem>>
    %93 = arith.index_cast %arg0 : i32 to index
    %c12 = arith.constant 12 : index
    %94 = memref.load %arg5[%93, %c12] : memref<2x30xf32, #tpu.memory_space<smem>>
    %95 = arith.index_cast %arg0 : i32 to index
    %c13 = arith.constant 13 : index
    %96 = memref.load %arg5[%95, %c13] : memref<2x30xf32, #tpu.memory_space<smem>>
    %97 = arith.index_cast %arg0 : i32 to index
    %c14 = arith.constant 14 : index
    %98 = memref.load %arg5[%97, %c14] : memref<2x30xf32, #tpu.memory_space<smem>>
    %99 = arith.index_cast %arg0 : i32 to index
    %c15 = arith.constant 15 : index
    %100 = memref.load %arg5[%99, %c15] : memref<2x30xf32, #tpu.memory_space<smem>>
    %101 = arith.index_cast %arg0 : i32 to index
    %c16 = arith.constant 16 : index
    %102 = memref.load %arg5[%101, %c16] : memref<2x30xf32, #tpu.memory_space<smem>>
    %103 = arith.index_cast %arg0 : i32 to index
    %c17 = arith.constant 17 : index
    %104 = memref.load %arg5[%103, %c17] : memref<2x30xf32, #tpu.memory_space<smem>>
    %105 = arith.index_cast %arg0 : i32 to index
    %c18 = arith.constant 18 : index
    %106 = memref.load %arg5[%105, %c18] : memref<2x30xf32, #tpu.memory_space<smem>>
    %107 = arith.index_cast %arg0 : i32 to index
    %c19 = arith.constant 19 : index
    %108 = memref.load %arg5[%107, %c19] : memref<2x30xf32, #tpu.memory_space<smem>>
    %109 = vector.broadcast %92 : f32 to vector<16x16xf32>
    %110 = arith.mulf %109, %28 : vector<16x16xf32>
    %111 = vector.broadcast %90 : f32 to vector<16x16xf32>
    %112 = arith.addf %111, %110 : vector<16x16xf32>
    %113 = vector.broadcast %94 : f32 to vector<16x16xf32>
    %114 = arith.mulf %113, %29 : vector<16x16xf32>
    %115 = arith.addf %112, %114 : vector<16x16xf32>
    %116 = vector.broadcast %96 : f32 to vector<16x16xf32>
    %117 = arith.mulf %116, %30 : vector<16x16xf32>
    %118 = arith.addf %115, %117 : vector<16x16xf32>
    %119 = vector.broadcast %98 : f32 to vector<16x16xf32>
    %120 = arith.mulf %119, %31 : vector<16x16xf32>
    %121 = arith.addf %118, %120 : vector<16x16xf32>
    %122 = vector.broadcast %100 : f32 to vector<16x16xf32>
    %123 = arith.mulf %122, %32 : vector<16x16xf32>
    %124 = arith.addf %121, %123 : vector<16x16xf32>
    %125 = vector.broadcast %102 : f32 to vector<16x16xf32>
    %126 = arith.mulf %125, %33 : vector<16x16xf32>
    %127 = arith.addf %124, %126 : vector<16x16xf32>
    %128 = vector.broadcast %104 : f32 to vector<16x16xf32>
    %129 = arith.mulf %128, %34 : vector<16x16xf32>
    %130 = arith.addf %127, %129 : vector<16x16xf32>
    %131 = vector.broadcast %106 : f32 to vector<16x16xf32>
    %132 = arith.mulf %131, %35 : vector<16x16xf32>
    %133 = arith.addf %130, %132 : vector<16x16xf32>
    %134 = vector.broadcast %108 : f32 to vector<16x16xf32>
    %135 = arith.mulf %134, %36 : vector<16x16xf32>
    %136 = arith.addf %133, %135 : vector<16x16xf32>
    %c0_23 = arith.constant 0 : index
    %c1_24 = arith.constant 1 : index
    %c0_25 = arith.constant 0 : index
    %c0_26 = arith.constant 0 : index
    %137 = vector.load %arg2[%c0_23, %c1_24, %c0_25, %c0_26] : memref<1x3x16x16xf32, #tpu.memory_space<vmem>>, vector<1x1x16x16xf32>
    %138 = vector.shape_cast %137 : vector<1x1x16x16xf32> to vector<16x16xf32>
    %139 = arith.subf %138, %136 : vector<16x16xf32>
    %140 = arith.mulf %139, %139 : vector<16x16xf32>
    %141 = arith.addf %88, %140 : vector<16x16xf32>
    %142 = arith.index_cast %arg0 : i32 to index
    %c20 = arith.constant 20 : index
    %143 = memref.load %arg5[%142, %c20] : memref<2x30xf32, #tpu.memory_space<smem>>
    %144 = arith.index_cast %arg0 : i32 to index
    %c21 = arith.constant 21 : index
    %145 = memref.load %arg5[%144, %c21] : memref<2x30xf32, #tpu.memory_space<smem>>
    %146 = arith.index_cast %arg0 : i32 to index
    %c22 = arith.constant 22 : index
    %147 = memref.load %arg5[%146, %c22] : memref<2x30xf32, #tpu.memory_space<smem>>
    %148 = arith.index_cast %arg0 : i32 to index
    %c23 = arith.constant 23 : index
    %149 = memref.load %arg5[%148, %c23] : memref<2x30xf32, #tpu.memory_space<smem>>
    %150 = arith.index_cast %arg0 : i32 to index
    %c24 = arith.constant 24 : index
    %151 = memref.load %arg5[%150, %c24] : memref<2x30xf32, #tpu.memory_space<smem>>
    %152 = arith.index_cast %arg0 : i32 to index
    %c25 = arith.constant 25 : index
    %153 = memref.load %arg5[%152, %c25] : memref<2x30xf32, #tpu.memory_space<smem>>
    %154 = arith.index_cast %arg0 : i32 to index
    %c26 = arith.constant 26 : index
    %155 = memref.load %arg5[%154, %c26] : memref<2x30xf32, #tpu.memory_space<smem>>
    %156 = arith.index_cast %arg0 : i32 to index
    %c27 = arith.constant 27 : index
    %157 = memref.load %arg5[%156, %c27] : memref<2x30xf32, #tpu.memory_space<smem>>
    %158 = arith.index_cast %arg0 : i32 to index
    %c28 = arith.constant 28 : index
    %159 = memref.load %arg5[%158, %c28] : memref<2x30xf32, #tpu.memory_space<smem>>
    %160 = arith.index_cast %arg0 : i32 to index
    %c29 = arith.constant 29 : index
    %161 = memref.load %arg5[%160, %c29] : memref<2x30xf32, #tpu.memory_space<smem>>
    %162 = vector.broadcast %145 : f32 to vector<16x16xf32>
    %163 = arith.mulf %162, %28 : vector<16x16xf32>
    %164 = vector.broadcast %143 : f32 to vector<16x16xf32>
    %165 = arith.addf %164, %163 : vector<16x16xf32>
    %166 = vector.broadcast %147 : f32 to vector<16x16xf32>
    %167 = arith.mulf %166, %29 : vector<16x16xf32>
    %168 = arith.addf %165, %167 : vector<16x16xf32>
    %169 = vector.broadcast %149 : f32 to vector<16x16xf32>
    %170 = arith.mulf %169, %30 : vector<16x16xf32>
    %171 = arith.addf %168, %170 : vector<16x16xf32>
    %172 = vector.broadcast %151 : f32 to vector<16x16xf32>
    %173 = arith.mulf %172, %31 : vector<16x16xf32>
    %174 = arith.addf %171, %173 : vector<16x16xf32>
    %175 = vector.broadcast %153 : f32 to vector<16x16xf32>
    %176 = arith.mulf %175, %32 : vector<16x16xf32>
    %177 = arith.addf %174, %176 : vector<16x16xf32>
    %178 = vector.broadcast %155 : f32 to vector<16x16xf32>
    %179 = arith.mulf %178, %33 : vector<16x16xf32>
    %180 = arith.addf %177, %179 : vector<16x16xf32>
    %181 = vector.broadcast %157 : f32 to vector<16x16xf32>
    %182 = arith.mulf %181, %34 : vector<16x16xf32>
    %183 = arith.addf %180, %182 : vector<16x16xf32>
    %184 = vector.broadcast %159 : f32 to vector<16x16xf32>
    %185 = arith.mulf %184, %35 : vector<16x16xf32>
    %186 = arith.addf %183, %185 : vector<16x16xf32>
    %187 = vector.broadcast %161 : f32 to vector<16x16xf32>
    %188 = arith.mulf %187, %36 : vector<16x16xf32>
    %189 = arith.addf %186, %188 : vector<16x16xf32>
    %c0_27 = arith.constant 0 : index
    %c2_28 = arith.constant 2 : index
    %c0_29 = arith.constant 0 : index
    %c0_30 = arith.constant 0 : index
    %190 = vector.load %arg2[%c0_27, %c2_28, %c0_29, %c0_30] : memref<1x3x16x16xf32, #tpu.memory_space<vmem>>, vector<1x1x16x16xf32>
    %191 = vector.shape_cast %190 : vector<1x1x16x16xf32> to vector<16x16xf32>
    %192 = arith.subf %191, %189 : vector<16x16xf32>
    %193 = arith.mulf %192, %192 : vector<16x16xf32>
    %194 = arith.addf %141, %193 : vector<16x16xf32>
    %c0_31 = arith.constant 0 : index
    %c0_32 = arith.constant 0 : index
    %c0_33 = arith.constant 0 : index
    %c0_34 = arith.constant 0 : index
    %195 = vector.load %arg4[%c0_31, %c0_32, %c0_33, %c0_34] : memref<1x1x16x16xf32, #tpu.memory_space<vmem>>, vector<1x1x16x16xf32>
    %196 = vector.shape_cast %195 : vector<1x1x16x16xf32> to vector<16x16xf32>
    %197 = arith.mulf %194, %196 : vector<16x16xf32>
    %198 = vector.shape_cast %197 : vector<16x16xf32> to vector<1x16x16xf32>
    %cst_35 = arith.constant dense<0.000000e+00> : vector<1xf32>
    %199 = vector.multi_reduction <add>, %198, %cst_35 [1, 2] : vector<1x16x16xf32> to vector<1xf32>
    %200 = vector.shape_cast %199 : vector<1xf32> to vector<1x1x1xf32>
    %201 = vector.extract %200[0, 0, 0] : f32 from vector<1x1x1xf32>
    %202 = vector.broadcast %201 : f32 to vector<1x1xf32>
    %c0_36 = arith.constant 0 : index
    %c0_37 = arith.constant 0 : index
    %c0_38 = arith.constant 0 : index
    %c0_39 = arith.constant 0 : index
    %203 = vector.load %arg4[%c0_36, %c0_37, %c0_38, %c0_39] : memref<1x1x16x16xf32, #tpu.memory_space<vmem>>, vector<1x1x16x16xf32>
    %204 = vector.shape_cast %203 : vector<1x1x16x16xf32> to vector<1x16x16xf32>
    %205 = vector.shape_cast %204 : vector<1x16x16xf32> to vector<1x1x16x16xf32>
    %cst_40 = arith.constant dense<0.000000e+00> : vector<1xf32>
    %206 = vector.multi_reduction <add>, %205, %cst_40 [1, 2, 3] : vector<1x1x16x16xf32> to vector<1xf32>
    %207 = vector.shape_cast %206 : vector<1xf32> to vector<1x1x1x1xf32>
    %208 = vector.extract %207[0, 0, 0, 0] : f32 from vector<1x1x1x1xf32>
    %cst_41 = arith.constant 3.000000e+00 : f32
    %209 = arith.mulf %208, %cst_41 : f32
    %210 = vector.broadcast %209 : f32 to vector<1x1xf32>
    %c0_i32 = arith.constant 0 : i32
    %211 = arith.cmpi eq, %arg0, %c0_i32 : i32
    %c0_i32_42 = arith.constant 0 : i32
    %212 = arith.cmpi eq, %arg1, %c0_i32_42 : i32
    %213 = arith.andi %211, %212 : i1
    %214 = arith.extui %213 : i1 to i32
    %c0_i32_43 = arith.constant 0 : i32
    %215 = arith.cmpi ne, %214, %c0_i32_43 : i32
    scf.if %215 {
      %cst_52 = arith.constant 0.000000e+00 : f32
      %222 = vector.broadcast %cst_52 : f32 to vector<1x1xf32>
      %c0_53 = arith.constant 0 : index
      %c0_54 = arith.constant 0 : index
      %223 = vector.load %arg6[%c0_53, %c0_54] : memref<1x1xf32, #tpu.memory_space<vmem>>, vector<1x1xf32>
      tpu.vector_store %arg6[%c0_53, %c0_54], %222 {strides = array<i32>} : memref<1x1xf32, #tpu.memory_space<vmem>>, vector<1x1xf32>,
      %cst_55 = arith.constant 0.000000e+00 : f32
      %224 = vector.broadcast %cst_55 : f32 to vector<1x1xf32>
      %c0_56 = arith.constant 0 : index
      %c0_57 = arith.constant 0 : index
      %225 = vector.load %arg7[%c0_56, %c0_57] : memref<1x1xf32, #tpu.memory_space<vmem>>, vector<1x1xf32>
      tpu.vector_store %arg7[%c0_56, %c0_57], %224 {strides = array<i32>} : memref<1x1xf32, #tpu.memory_space<vmem>>, vector<1x1xf32>,
    } else {
    }
    %c0_44 = arith.constant 0 : index
    %c0_45 = arith.constant 0 : index
    %216 = vector.load %arg6[%c0_44, %c0_45] : memref<1x1xf32, #tpu.memory_space<vmem>>, vector<1x1xf32>
    %217 = arith.addf %216, %202 : vector<1x1xf32>
    %c0_46 = arith.constant 0 : index
    %c0_47 = arith.constant 0 : index
    %218 = vector.load %arg6[%c0_46, %c0_47] : memref<1x1xf32, #tpu.memory_space<vmem>>, vector<1x1xf32>
    tpu.vector_store %arg6[%c0_46, %c0_47], %217 {strides = array<i32>} : memref<1x1xf32, #tpu.memory_space<vmem>>, vector<1x1xf32>,
    %c0_48 = arith.constant 0 : index
    %c0_49 = arith.constant 0 : index
    %219 = vector.load %arg7[%c0_48, %c0_49] : memref<1x1xf32, #tpu.memory_space<vmem>>, vector<1x1xf32>
    %220 = arith.addf %219, %210 : vector<1x1xf32>
    %c0_50 = arith.constant 0 : index
    %c0_51 = arith.constant 0 : index
    %221 = vector.load %arg7[%c0_50, %c0_51] : memref<1x1xf32, #tpu.memory_space<vmem>>, vector<1x1xf32>
    tpu.vector_store %arg7[%c0_50, %c0_51], %220 {strides = array<i32>} : memref<1x1xf32, #tpu.memory_space<vmem>>, vector<1x1xf32>,
    return
  }
  func.func @transform_0(%arg0: i32, %arg1: i32) -> (i32, i32, i32, i32) {
    %c0_i32 = arith.constant 0 : i32
    %c0_i32_0 = arith.constant 0 : i32
    %c0_i32_1 = arith.constant 0 : i32
    return %arg0, %c0_i32, %arg1, %c0_i32_0 : i32, i32, i32, i32
  }
  func.func @transform_1(%arg0: i32, %arg1: i32) -> (i32, i32, i32, i32) {
    %c0_i32 = arith.constant 0 : i32
    %c0_i32_0 = arith.constant 0 : i32
    %c0_i32_1 = arith.constant 0 : i32
    return %arg0, %c0_i32, %arg1, %c0_i32_0 : i32, i32, i32, i32
  }
  func.func @transform_2(%arg0: i32, %arg1: i32) -> (i32, i32, i32, i32) {
    %c0_i32 = arith.constant 0 : i32
    %c0_i32_0 = arith.constant 0 : i32
    %c0_i32_1 = arith.constant 0 : i32
    return %arg0, %c0_i32, %arg1, %c0_i32_0 : i32, i32, i32, i32
  }
  func.func @transform_3(%arg0: i32, %arg1: i32) -> (i32, i32) {
    %c0_i32 = arith.constant 0 : i32
    %c0_i32_0 = arith.constant 0 : i32
    %c0_i32_1 = arith.constant 0 : i32
    return %c0_i32, %c0_i32_0 : i32, i32
  }
  func.func @transform_4(%arg0: i32, %arg1: i32) -> (i32, i32) {
    %c0_i32 = arith.constant 0 : i32
    %c0_i32_0 = arith.constant 0 : i32
    %c0_i32_1 = arith.constant 0 : i32
    return %c0_i32, %c0_i32_0 : i32, i32
  }
  func.func @transform_5(%arg0: i32, %arg1: i32) -> (i32, i32) {
    %c0_i32 = arith.constant 0 : i32
    %c0_i32_0 = arith.constant 0 : i32
    %c0_i32_1 = arith.constant 0 : i32
    return %c0_i32, %c0_i32_0 : i32, i32
  }
}

</mosaic_0001>

<bundles_post_ra>
// kernel: tpu_custom_call.1
= control target key start
LH: loop header
LB: loop body
LE: loop exit
PB: predicated region body
PF: predicated region fallthrough
CT: control target
= control target key end

     0   :  { %s1881_s0 = inlined_call_operand.hbm [shape: f32[2,3,16,16], index: 0, kind: input, shape index: {}]   ;;  %s1882_s1 = inlined_call_operand.hbm [shape: f32[2,3,16,16], index: 1, kind: input, shape index: {}]   ;;  %s1883_s2 = inlined_call_operand.hbm [shape: f32[2,1,16,16], index: 2, kind: input, shape index: {}]   ;;  %s1884_s3 = inlined_call_operand.vmem [shape: f32[2,30], index: 3, kind: input, shape index: {}]   ;;  %s1885_s4 = inlined_call_operand.hbm [shape: f32[1,1], index: 4, kind: output, shape index: {0}]   ;;  %s1886_s5 = inlined_call_operand.hbm [shape: f32[1,1], index: 5, kind: output, shape index: {1}]  }
   0x1   :  { %1911 = sst [smem:[#allocation31_spill]] %s1881_s0 }
   0x2   :  { %1912 = sst [smem:[#allocation32_spill]] %s1882_s1 }
   0x3   :  { %1913 = sst [smem:[#allocation33_spill]] %s1883_s2 }
   0x4   :  { %1914 = sst [smem:[#allocation34_spill]] %s1884_s3 }
   0x5   :  { %1915 = sst [smem:[#allocation35_spill]] %s1885_s4 }
   0x6   :  { %1916 = sst [smem:[#allocation36_spill]] %s1886_s5 }
   0x7   :  { %11 = vsyncpa [#allocation3], 0 }
   0x8   :  { %13 = vsyncpa [#allocation3 + $0x1], 0 }
   0x9   :  { %14 = vsyncpa [#allocation7], 0 }
   0xa   :  { %16 = vsyncpa [#allocation7 + $0x1], 0 }
   0xb   :  { %17 = vsyncpa [#allocation5], 0 }
   0xc   :  { %18 = vsyncpa [#allocation4], 0 }
   0xd   :  { %19 = vsyncpa [#allocation12], 0  ;;  %s1248_s18 = smov 0   ;;  %s1250_s19 = smov 0  }
   0xe   :  { %s1252_s20 = smov 0   ;;  %s1254_s21 = smov 0  }
   0xf   :  { %s1256_s22 = smov 0   ;;  %s1258_s23 = smov 0  }
  0x10 LB: > { %1917 = sst [smem:[#allocation18_spill]] %s1191_s19  ;;  %s37_s24 = sadd.s32 1, %s1203_s22  ;;  %s1207_s23 = sphi %s1258_s23, %s25_s23   ;;  %s1203_s22 = sphi %s1256_s22, %s1960_s22   ;;  %s1199_s21 = sphi %s1254_s21, %s1959_s21   ;;  %s1195_s20 = sphi %s1252_s20, %s1958_s20   ;;  %s1191_s19 = sphi %s1250_s19, %s1957_s19   ;;  %s1187_s18 = sphi %s1248_s18, %s1956_s18  }
  0x11   : > { %1918 = sst [smem:[#allocation19_spill]] %s1195_s20  ;;  %s46_s25 = sadd.s32 1, %s1195_s20 }
  0x12   : > { %1919 = sst [smem:[#allocation20_spill]] %s1199_s21  ;;  %p39_p0 = scmp.ge.s32.totalorder %s37_s24, 2 }
  0x13   : > { %1920 = sst [smem:[#allocation21_spill]] %s1203_s22  ;;  %p53_p1 = scmp.ne.s32.totalorder %s1195_s20, %s1191_s19 }
  0x14   : > { %1921 = sst [smem:[#allocation22_spill]] %s1207_s23  ;;  %p54_p2 = scmp.eq.s32.totalorder %s1207_s23, 0 }
  0x15   : > { %s1962_s24 = smov (%p39_p0, %s37_s24), 0  ;;  %p916_p4 = scmp.lt.s32.totalorder %s1207_s23, 2 }
  0x16   : > { %1922 = sst [smem:[#allocation23_spill]] %s1962_s24  ;;  %p55_p3 = por %p54_p2, %p53_p1 }
  0x17   : > { %s41_s26 = ssub.s32 %s1203_s22, %s1962_s24  ;;  %s1289_s27 = sand.u32 1, %s1195_s20  }
  0x18   : > { %p44_p5 = scmp.eq.s32.totalorder %s41_s26, 0  ;;  %s874_s28 = smul.u32 48, %s1289_s27 }
  0x19   : > { %s875_s29 = smul.u32 768, %s1203_s22  ;;  %p1293_p6 = pnand %p916_p4, %p55_p3 }
  0x1a   : > { %s1298_s6 = scalar_select %p44_p5, %s1195_s20, %s46_s25  }
  0x1b   : > { %s236_s7 = sand.u32 1, %s1207_s23   ;;  %s1925_s1 = sld [smem:[#allocation32_spill]] }
  0x1c   : > { %1924 = sst [smem:[#allocation24_spill]] %s1298_s6  ;;  %s240_s11 = scalar_lea.vmem [#allocation6], %s874_s28 }
  0x1d   : > { %s249_s12 = sshll.u32 %s240_s11, 4  ;;  %s1312_s13 = scalar_lea.sflag [#allocation7], %s236_s7  ;;  %s1310_s12 = int_to_ptr.vmem [resolvable:$true] %s249_s12 }
  0x1e   : > { %p1318_p8 = pneg %p1293_p6 }
  0x21   : > { %s1306_s10 = scalar_lea.hbm %s1925_s1, %s875_s29  ;;  %s989_s25 = scalar_lea.hbm %s1925_s1, 1536 }
  0x22   : > { %s984_s14 = scalar_lea.hbm %s1306_s10, 768  ;;  %p990_p11 = scmp.lt.u32.totalorder %s1306_s10, %s1925_s1 }
  0x23   : > { %p985_p7 = scmp.ne.s32.totalorder %s1306_s10, %s984_s14  ;;  %p991_p12 = scmp.lt.u32.totalorder %s989_s25, %s984_s14 }
  0x24   : > { %p993_p0 = scmp.lt.u32.totalorder %s984_s14, %s1306_s10 }
  0x25   : > { %p987_p9 = pnand %p1318_p8, %p985_p7  ;;  %p992_p13 = por %p991_p12, %p990_p11 }
  0x27   : > { %p988_p10 = pneg %p987_p9  ;;  %p994_p1 = por %p993_p0, %p992_p13 }
  0x29   : > { %p995_p2 = pnand %p994_p1, %p988_p10 }
  0x2b   : > { %998 = shalt.err (!%p995_p2)
}
  0x2c   : > { %s999_s7 = scalar_lea.vmem %s1310_s12, 768  ;;  %s1209_s9 = smov [#allocation6]  }
  0x2d   : > { %p1000_p3 = scmp.ne.s32.totalorder %s1310_s12, %s999_s7  ;;  %s1004_s11 = sshll.u32 %s1209_s9, 4  ;;  %s1005_s11 = int_to_ptr.vmem [resolvable:$false] %s1004_s11 }
  0x2e   : > { %s1006_s16 = scalar_lea.vmem %s1005_s11, 1536  ;;  %p1007_p7 = scmp.lt.s32.totalorder %s1310_s12, %s1005_s11 }
  0x2f   : > { %p1002_p4 = pnand %p1000_p3, %p1318_p8  ;;  %p1008_p9 = scmp.lt.s32.totalorder %s1006_s16, %s999_s7 }
  0x31   : > { %p1003_p5 = pneg %p1002_p4  ;;  %p1009_p11 = por %p1008_p9, %p1007_p7 }
  0x33   : > { %p1010_p12 = pnand %p1009_p11, %p1003_p5 }
  0x35   : > { %1013 = shalt.err (!%p1010_p12)
}
  0x36   : > { %s1887_s14 = smov 128   ;;  %s1889_s17 = smov 8  }
  0x37   : > { %911 = dma.hbm_to_vmem [thread:$0]  (!%p1293_p6), %s1306_s10, 768, %s1310_s12, %s1312_s13, %s1887_s14, %s1887_s14, %s1889_s17  }
  0x38   : > { %s1346_s25 = sadd.s32 4294967295, %s1207_s23   ;;  %p59_p10 = scmp.ne.s32.totalorder %s1191_s19, %s1187_s18 }
  0x39   : > { %1927 = sst [smem:[#allocation25_spill]] %s1346_s25  ;;  %p1891_p13 = scmp.eq.s32.totalorder %s1346_s25, 0 }
  0x3a   : > { %p839_p0 = scmp.ge.s32.totalorder %s1207_s23, 1  ;;  %p189_p1 = scmp.lt.s32.totalorder %s1207_s23, 3 }
  0x3b   : > { %p1355_p2 = por %p1891_p13, %p59_p10  ;;  %s1930_s3 = sld [smem:[#allocation34_spill]] }
  0x3c   : > { %p1359_p3 = pnand %p839_p0, %p189_p1  ;;  %s1931_s0 = sld [smem:[#allocation31_spill]] }
  0x3d   : > { %s1928_s26 = scalar_select %p1355_p2, 1, 0 }
  0x3e   : > { %s1929_s8 = scalar_select %p1359_p3, 1, 0 }
  0x3f   : > { %p901_p4 = pneg %p1359_p3  ;;  %s217_s14 = scalar_lea.vmem [#allocation2], %s874_s28 }
  0x40   : > { %s226_s10 = sshll.u32 %s217_s14, 4  ;;  %s1383_s10 = int_to_ptr.vmem [resolvable:$true] %s226_s10 }
  0x41   : > { %s202_s7 = sshll.u32 %s1930_s3, 4  ;;  %p1377_p5 = pnand %p901_p4, %p1891_p13  ;;  %s203_s7 = int_to_ptr.vmem [resolvable:$true] %s202_s7 }
  0x42   : > { %s1373_s11 = scalar_lea.hbm %s1931_s0, %s875_s29  ;;  %s1014_s17 = scalar_lea.vmem %s203_s7, 32 }
  0x43   : > { %p1015_p7 = scmp.ne.s32.totalorder %s203_s7, %s1014_s17  ;;  %p1016_p9 = pneg %p1377_p5 }
  0x44   : > { %p1022_p10 = scmp.lt.s32.totalorder %s203_s7, %s203_s7  ;;  %p1023_p0 = scmp.lt.s32.totalorder %s1014_s17, %s1014_s17 }
  0x45   : > { %p1017_p11 = pnand %p1016_p9, %p1015_p7 }
  0x46   : > { %p1024_p1 = por %p1023_p0, %p1022_p10 }
  0x47   : > { %p1018_p12 = pneg %p1017_p11 }
  0x49   : > { %p1025_p4 = pnand %p1024_p1, %p1018_p12 }
  0x4b   : > { %1028 = shalt.err (!%p1025_p4)
}
  0x4c   : > { %s1212_s29 = smov [#allocation9]   ;;  %s214_s28 = scalar_lea.sflag [#allocation3], %s1289_s27 }
  0x4d   : > { %904 = dma.vmem_to_smem (!%p1377_p5), %s203_s7, 32, %s1212_s29, [#allocation5]  }
  0x4e   : > { %s1029_s14 = scalar_lea.hbm %s1373_s11, 768  ;;  %s1034_s9 = scalar_lea.hbm %s1931_s0, 1536 }
  0x4f   : > { %p1030_p13 = scmp.ne.s32.totalorder %s1373_s11, %s1029_s14  ;;  %p1035_p11 = scmp.lt.u32.totalorder %s1373_s11, %s1931_s0 }
  0x50   : > { %p1036_p12 = scmp.lt.u32.totalorder %s1034_s9, %s1029_s14  ;;  %p1038_p0 = scmp.lt.u32.totalorder %s1029_s14, %s1373_s11 }
  0x51   : > { %p1032_p7 = pnand %p1030_p13, %p1318_p8 }
  0x52   : > { %p1037_p10 = por %p1036_p12, %p1035_p11 }
  0x53   : > { %p1033_p9 = pneg %p1032_p7 }
  0x54   : > { %p1039_p1 = por %p1038_p0, %p1037_p10 }
  0x56   : > { %p1040_p4 = pnand %p1039_p1, %p1033_p9 }
  0x58   : > { %1043 = shalt.err (!%p1040_p4)
}
  0x59   : > { %s1044_s7 = scalar_lea.vmem %s1383_s10, 768  ;;  %s1213_s16 = smov [#allocation2]  }
  0x5a   : > { %p1045_p13 = scmp.ne.s32.totalorder %s1383_s10, %s1044_s7  ;;  %s1049_s29 = sshll.u32 %s1213_s16, 4  ;;  %s1050_s29 = int_to_ptr.vmem [resolvable:$false] %s1049_s29 }
  0x5b   : > { %s1051_s1 = scalar_lea.vmem %s1050_s29, 1536  ;;  %p1052_p2 = scmp.lt.s32.totalorder %s1383_s10, %s1050_s29 }
  0x5c   : > { %p1047_p5 = pnand %p1045_p13, %p1318_p8  ;;  %p1053_p3 = scmp.lt.s32.totalorder %s1051_s1, %s1044_s7 }
  0x5e   : > { %p1048_p7 = pneg %p1047_p5  ;;  %p1054_p11 = por %p1053_p3, %p1052_p2 }
  0x60   : > { %p1055_p12 = pnand %p1054_p11, %p1048_p7 }
  0x62   : > { %1058 = shalt.err (!%p1055_p12)
}
  0x63   : > { %s1933_s12 = smov 8   ;;  %s1934_s14 = smov 128  }
  0x64   : > { %908 = dma.hbm_to_vmem [thread:$0]  (!%p1293_p6), %s1373_s11, 768, %s1383_s10, %s214_s28, %s1934_s14, %s1934_s14, %s1933_s12  }
  0x65   : > { %s872_s17 = sshll.u32 %s1203_s22, 8  ;;  %s1935_s18 = sshll.u32 %s1289_s27, 4 }
  0x66   : > { %s263_s9 = scalar_lea.vmem [#allocation8], %s1935_s18  ;;  %s1936_s2 = sld [smem:[#allocation33_spill]] }
  0x67   : > { %s272_s7 = sshll.u32 %s263_s9, 4  ;;  %s1425_s7 = int_to_ptr.vmem [resolvable:$true] %s272_s7 }
  0x6c   : > { %s1423_s1 = scalar_lea.hbm %s1936_s2, %s872_s17  ;;  %s1064_s10 = scalar_lea.hbm %s1936_s2, 512 }
  0x6d   : > { %s1059_s0 = scalar_lea.hbm %s1423_s1, 256  ;;  %p1065_p10 = scmp.lt.u32.totalorder %s1423_s1, %s1936_s2 }
  0x6e   : > { %p1060_p2 = scmp.ne.s32.totalorder %s1423_s1, %s1059_s0  ;;  %p1066_p0 = scmp.lt.u32.totalorder %s1064_s10, %s1059_s0 }
  0x6f   : > { %p1068_p4 = scmp.lt.u32.totalorder %s1059_s0, %s1423_s1 }
  0x70   : > { %p1062_p3 = pnand %p1060_p2, %p1318_p8  ;;  %p1067_p1 = por %p1066_p0, %p1065_p10 }
  0x72   : > { %p1063_p9 = pneg %p1062_p3  ;;  %p1069_p13 = por %p1068_p4, %p1067_p1 }
  0x74   : > { %p1070_p5 = pnand %p1069_p13, %p1063_p9 }
  0x76   : > { %1073 = shalt.err (!%p1070_p5)
}
  0x77   : > { %s1074_s17 = scalar_lea.vmem %s1425_s7, 256  ;;  %s1214_s9 = smov [#allocation8]  }
  0x78   : > { %p1075_p7 = scmp.ne.s32.totalorder %s1425_s7, %s1074_s17  ;;  %s1079_s16 = sshll.u32 %s1214_s9, 4  ;;  %s1080_s16 = int_to_ptr.vmem [resolvable:$false] %s1079_s16 }
  0x79   : > { %s1081_s29 = scalar_lea.vmem %s1080_s16, 512  ;;  %p1082_p2 = scmp.lt.s32.totalorder %s1425_s7, %s1080_s16 }
  0x7a   : > { %p1077_p11 = pnand %p1075_p7, %p1318_p8  ;;  %p1083_p3 = scmp.lt.s32.totalorder %s1081_s29, %s1074_s17 }
  0x7c   : > { %p1078_p12 = pneg %p1077_p11  ;;  %p1084_p10 = por %p1083_p3, %p1082_p2 }
  0x7e   : > { %p1085_p0 = pnand %p1084_p10, %p1078_p12 }
  0x80   : > { %1088 = shalt.err (!%p1085_p0)
}
  0x81   : > { %914 = dma.hbm_to_vmem [thread:$0]  (!%p1293_p6), %s1423_s1, 256, %s1425_s7, %s1312_s13, %s1934_s14, %s1934_s14, %s1933_s12  }
  0x82   : > { %p1937_p8 = scmp.ne.s32.totalorder %s1929_s8, 0 }
  0x84   : > { %284 = sbr.rel (%p1937_p8) target bundleno = 518 (0x206), region = 36 }
  0x8b   : > { %s286_s0 = sand.u32 1, %s1191_s19   ;;  %p1939_p9 = scmp.ne.s32.totalorder %s1928_s26, 0 }
  0x8c   : > { %s878_s15 = smul.u32 48, %s286_s0  ;;  %s287_s11 = scalar_lea.sflag [#allocation3], %s286_s0 }
  0x8e   : > { %s1455_s27 = scalar_lea.vmem [#allocation2], %s878_s15 }
  0x8f   : > { %1938 = sst [smem:[#allocation26_spill]] %s1455_s27 }
  0x90   : > { %1166 = dma.done.wait (%p1939_p9), %s287_s11, 768  }
  0x91   : > { %1168 = vsyncadd (%p1939_p9), %s287_s11, 4294966528  ;;  %s295_s30 = sand.u32 1, %s1346_s25   ;;  %s299_s13 = scalar_lea.vmem [#allocation6], %s878_s15 }
  0x92   : > { %s296_s10 = scalar_lea.sflag [#allocation7], %s295_s30 }
  0x93   : > { %1170 = dma.done.wait (%p1939_p9), %s296_s10, 1024  }
  0x94   : > { %1172 = vsyncadd (%p1939_p9), %s296_s10, 4294966272  ;;  %s848_s8 = sshll.u32 %s286_s0, 4  ;;  %p1941_p6 = scmp.eq.s32.totalorder %s1346_s25, 0 }
  0x95   : > { %s1466_s12 = scalar_lea.vmem [#allocation8], %s848_s8 }
  0x96   : > { %1940 = sst [smem:[#allocation27_spill]] %s1466_s12 }
  0x97   : > { %1174 = dma.done.wait (%p1941_p6), [#allocation5], 32   ;;  %p1942_p1 = pmov %p1941_p6 }
  0x99   : > { %1176 = vsyncadd (%p1942_p1), [#allocation5], 4294967264 }
  0x9a   : > { %317 = sfence }
  0x9b   : > { %v348_v0 = vld [vmem:[%s299_s13] sm:$0xff]  ;;  %v349_v1 = vld [vmem:[%s299_s13 + $0x8] sm:$0xff]  ;;  %v852_v2 = vld [vmem:[%s299_s13 + $0x10] sm:$0xff]  ;;  %s1473_s26 = sshll.u32 %s1199_s21, 7  ;;  %vm642_vm4 = vcmask 130048  }
  0x9c   : > { %v850_v3 = vadd.f32 -0.5, %v348_v0  ;;  %v851_v4 = vadd.f32 -0.5, %v349_v1  ;;  %v853_v5 = vld [vmem:[%s299_s13 + $0x18] sm:$0xff]  ;;  %v854_v6 = vadd.f32 -0.5, %v852_v2  ;;  %v856_v7 = vld [vmem:[%s299_s13 + $0x20] sm:$0xff]  ;;  %v857_v8 = vld [vmem:[%s299_s13 + $0x28] sm:$0xff] }
  0x9d   : > { %v855_v9 = vadd.f32 -0.5, %v853_v5  ;;  %v858_v10 = vadd.f32 -0.5, %v856_v7  ;;  %v859_v11 = vadd.f32 -0.5, %v857_v8  ;;  %1943 = sst [smem:[#allocation28_spill]] %s1473_s26  ;;  %s418_s14 = sadd.s32 1, %s1473_s26 }
  0x9e   : > { %v1475_v12 = vmul.f32 2.0, %v850_v3  ;;  %v1477_v13 = vmul.f32 2.0, %v851_v4  ;;  %v1479_v14 = vmul.f32 2.0, %v854_v6  ;;  %s420_s7 = sadd.s32 2, %s1473_s26  ;;  %s422_s1 = sadd.s32 3, %s1473_s26 }
  0x9f   : > { %v1481_v15 = vmul.f32 2.0, %v855_v9  ;;  %v1483_v16 = vmul.f32 2.0, %v858_v10  ;;  %v1485_v17 = vmul.f32 2.0, %v859_v11  ;;  %s1503_s28 = sld [smem:[#allocation9 + %s1473_s26]]  ;;  %s424_s18 = sadd.s32 4, %s1473_s26 }
  0xa0   : > { %v368_v18 = vmul.f32 %v1475_v12, %v1475_v12  ;;  %v369_v19 = vmul.f32 %v1477_v13, %v1477_v13  ;;  %v370_v20 = vmul.f32 %v1479_v14, %v1479_v14  ;;  %s1506_s17 = sld [smem:[#allocation9 + %s418_s14]]  ;;  %s426_s9 = sadd.s32 5, %s1473_s26 }
  0xa1   : > { %v371_v21 = vmul.f32 %v1481_v15, %v1481_v15  ;;  %v374_v22 = vmul.f32 %v1483_v16, %v1483_v16  ;;  %v375_v23 = vmul.f32 %v1485_v17, %v1485_v17  ;;  %s1509_s16 = sld [smem:[#allocation9 + %s420_s7]]  ;;  %s428_s15 = sadd.s32 6, %s1473_s26 }
  0xa2   : > { %v372_v24 = vadd.f32 %v370_v20, %v368_v18  ;;  %s1511_s29 = sld [smem:[#allocation9 + %s422_s1]]  ;;  %s430_s30 = sadd.s32 7, %s1473_s26 }
  0xa3   : > { %v373_v25 = vadd.f32 %v371_v21, %v369_v19  ;;  %s1513_s0 = sld [smem:[#allocation9 + %s424_s18]]  ;;  %s432_s10 = sadd.s32 8, %s1473_s26 }
  0xa4   : > { %v376_v26 = vadd.f32 %v374_v22, %v372_v24  ;;  %s1516_s11 = sld [smem:[#allocation9 + %s426_s9]]  ;;  %s434_s13 = sadd.s32 9, %s1473_s26 }
  0xa5   : > { %v377_v27 = vadd.f32 %v375_v23, %v373_v25  ;;  %s1521_s8 = sld [smem:[#allocation9 + %s428_s15]]  ;;  %s488_s14 = sadd.s32 10, %s1473_s26  ;;  %v439_v41 = vstv %s1503_s28 }
  0xa6   : > { %976 = vrsqrt.f32 %v376_v26  ;;  %s1524_s7 = sld [smem:[#allocation9 + %s430_s30]]  ;;  %s490_s1 = sadd.s32 11, %s1473_s26  ;;  %vm380_vm0 = vcmp.eq.f32.partialorder %v376_v26, inf  ;;  %v383_v29 = vand.u32 2147483648, %v376_v26  ;;  %vm382_vm1 = vcmp.eq.f32.partialorder %v376_v26, 0.0 }
  0xa7   : > { %978 = vrsqrt.f32 %v377_v27  ;;  %s1527_s18 = sld [smem:[#allocation9 + %s432_s10]]  ;;  %s492_s9 = sadd.s32 12, %s1473_s26  ;;  %vm387_vm2 = vcmp.eq.f32.partialorder %v377_v27, inf  ;;  %v390_v32 = vand.u32 2147483648, %v377_v27  ;;  %vm389_vm3 = vcmp.eq.f32.partialorder %v377_v27, 0.0 }
  0xa8   : > { %s1529_s2 = sld [smem:[#allocation9 + %s434_s13]]  ;;  %s494_s22 = sadd.s32 13, %s1473_s26  ;;  %v436_v40 = vstv %s1506_s17  ;;  %v442_v42 = vstv %s1509_s16  ;;  %v447_v43 = vstv %s1511_s29 }
  0xa9   : > { %s1531_s3 = sld [smem:[#allocation9 + %s488_s14]]  ;;  %s496_s6 = sadd.s32 14, %s1473_s26  ;;  %v452_v44 = vstv %s1513_s0 }
  0xaa   : > { %s1534_s24 = sld [smem:[#allocation9 + %s490_s1]]  ;;  %s498_s20 = sadd.s32 15, %s1473_s26  ;;  %v457_v45 = vstv %s1516_s11 }
  0xab   : > { %s1539_s19 = sld [smem:[#allocation9 + %s492_s9]]  ;;  %s500_s15 = sadd.s32 16, %s1473_s26  ;;  %v462_v46 = vstv %s1521_s8 }
  0xac   : > { %s1542_s23 = sld [smem:[#allocation9 + %s494_s22]]  ;;  %s502_s30 = sadd.s32 17, %s1473_s26  ;;  %v467_v47 = vstv %s1524_s7 }
  0xad   : > { %s1545_s10 = sld [smem:[#allocation9 + %s496_s6]]  ;;  %s504_s22 = sadd.s32 18, %s1473_s26  ;;  %v472_v48 = vstv %s1527_s18 }
  0xae   : > { %s1547_s13 = sld [smem:[#allocation9 + %s498_s20]]  ;;  %s506_s9 = sadd.s32 19, %s1473_s26  ;;  %v477_v49 = vstv %s1529_s2 }
  0xaf   : > { %s1549_s14 = sld [smem:[#allocation9 + %s500_s15]]  ;;  %s563_s6 = sadd.s32 20, %s1473_s26  ;;  %v511_v51 = vstv %s1531_s3 }
  0xb0   : > { %v977_v28 = vpop.eup %976  ;;  %s1552_s1 = sld [smem:[#allocation9 + %s502_s30]]  ;;  %s565_s20 = sadd.s32 21, %s1473_s26  ;;  %v508_v50 = vstv %s1534_s24 }
  0xb1   : > { %v979_v30 = vpop.eup %978  ;;  %v379_v31 = vmul.f32 %v977_v28, %v376_v26  ;;  %s1557_s5 = sld [smem:[#allocation9 + %s504_s22]]  ;;  %s567_s15 = sadd.s32 22, %s1473_s26  ;;  %v514_v52 = vstv %s1539_s19 }
  0xb2   : > { %v386_v33 = vmul.f32 %v979_v30, %v377_v27  ;;  %s1560_s4 = sld [smem:[#allocation9 + %s506_s9]]  ;;  %s569_s30 = sadd.s32 23, %s1473_s26  ;;  %v519_v53 = vstv %s1542_s23 }
  0xb3   : > { %v381_v34 = vsel %vm380_vm0, %v376_v26, %v379_v31  ;;  %s1563_s25 = sld [smem:[#allocation9 + %s563_s6]]  ;;  %s571_s12 = sadd.s32 24, %s1473_s26  ;;  %v524_v54 = vstv %s1545_s10 }
  0xb4   : > { %v384_v35 = vsel %vm382_vm1, %v383_v29, %v381_v34  ;;  %v388_v36 = vsel %vm387_vm2, %v377_v27, %v386_v33  ;;  %s1565_s21 = sld [smem:[#allocation9 + %s565_s20]]  ;;  %s573_s27 = sadd.s32 25, %s1473_s26  ;;  %v529_v55 = vstv %s1547_s13 }
  0xb5   : > { %v391_v37 = vsel %vm389_vm3, %v390_v32, %v388_v36  ;;  %v392_v38 = vadd.f32 1e-06, %v384_v35  ;;  %s1567_s22 = sld [smem:[#allocation9 + %s567_s15]]  ;;  %s577_s6 = sadd.s32 27, %s1473_s26  ;;  %v534_v56 = vstv %s1549_s14 }
  0xb6   : > { %v393_v39 = vadd.f32 1e-06, %v391_v37  ;;  %s1570_s9 = sld [smem:[#allocation9 + %s569_s30]]  ;;  %v539_v57 = vstv %s1552_s1 }
  0xb7   : > { %980 = vrcp.f32 %v392_v38  ;;  %s1575_s20 = sld [smem:[#allocation9 + %s571_s12]]  ;;  %v544_v58 = vstv %s1557_s5 }
  0xb8   : > { %1944 = sst [smem:[#allocation29_spill]] %s1560_s4  ;;  %982 = vrcp.f32 %v393_v39  ;;  %s575_s4 = sadd.s32 26, %s1473_s26 }
  0xb9   : > { %1945 = sst [smem:[#allocation30_spill]] %s1563_s25  ;;  %s1946_s26 = sld [smem:[#allocation29_spill]] }
  0xba   : > { %s1577_s25 = sld [smem:[#allocation9 + %s573_s27]]  ;;  %v583_v61 = vstv %s1565_s21 }
  0xbb   : > { %s1583_s15 = sld [smem:[#allocation9 + %s575_s4]]  ;;  %v589_v63 = vstv %s1567_s22 }
  0xbc   : > { %s1585_s30 = sld [smem:[#allocation9 + %s577_s6]]  ;;  %v594_v0 = vstv %s1570_s9 }
  0xbd   : > { %s1947_s27 = sld [smem:[#allocation30_spill]]  ;;  %v599_v5 = vstv %s1575_s20  ;;  %s1948_s4 = sld [smem:[#allocation28_spill]] }
  0xbe   : > { %s1949_s5 = sld [smem:[#allocation26_spill]]  ;;  %s1950_s21 = sld [smem:[#allocation27_spill]] }
  0xbf   : > { %v549_v59 = vstv %s1946_s26  ;;  %s1951_s24 = sld [smem:[#allocation20_spill]] }
  0xc0   : > { %v604_v9 = vstv %s1577_s25 }
  0xc1   : > { %v981_v60 = vpop.eup %980 }
  0xc2   : > { %v983_v1 = vpop.eup %982  ;;  %v1608_v2 = vmul.f32 %v981_v60, %v1475_v12  ;;  %v1611_v3 = vmul.f32 %v981_v60, %v1479_v14  ;;  %v1614_v4 = vmul.f32 %v981_v60, %v1483_v16  ;;  %v609_v12 = vstv %s1583_s15 }
  0xc3   : > { %v586_v62 = vstv %s1947_s27  ;;  %v1618_v6 = vmul.f32 %v983_v1, %v1477_v13  ;;  %v1621_v7 = vmul.f32 %v983_v1, %v1481_v15  ;;  %v1624_v8 = vmul.f32 %v983_v1, %v1485_v17  ;;  %s579_s2 = sadd.s32 28, %s1948_s4  ;;  %s581_s3 = sadd.s32 29, %s1948_s4 }
  0xc4   : > { %v1629_v10 = vmul.f32 %v1611_v3, %v1608_v2  ;;  %v1633_v11 = vmul.f32 %v1614_v4, %v1611_v3  ;;  %v614_v14 = vstv %s1585_s30  ;;  %v1647_v16 = vmul.f32 %v1614_v4, %v1608_v2  ;;  %s1745_s19 = sld [smem:[#allocation9 + %s579_s2]] }
  0xc5   : > { %v1639_v13 = vmul.f32 %v1621_v7, %v1618_v6  ;;  %v1643_v15 = vmul.f32 %v1624_v8, %v1621_v7  ;;  %v1651_v17 = vmul.f32 %v1608_v2, %v1608_v2  ;;  %v1655_v18 = vmul.f32 %v1624_v8, %v1618_v6  ;;  %s1747_s23 = sld [smem:[#allocation9 + %s581_s3]]  ;;  %p670_p4 = scmp.eq.s32.totalorder %s1951_s24, 0 }
  0xc6   : > { %v1659_v19 = vmul.f32 %v1618_v6, %v1618_v6  ;;  %v1663_v20 = vmul.f32 %v1611_v3, %v1611_v3  ;;  %v1667_v21 = vmul.f32 %v1621_v7, %v1621_v7  ;;  %v437_v22 = vmul.f32 %v436_v40, %v1608_v2 }
  0xc7   : > { %v438_v23 = vmul.f32 %v436_v40, %v1618_v6  ;;  %v443_v24 = vmul.f32 %v442_v42, %v1611_v3  ;;  %v444_v25 = vmul.f32 %v442_v42, %v1621_v7  ;;  %v1675_v26 = vmul.f32 %v1614_v4, %v1614_v4 }
  0xc8   : > { %v1679_v27 = vmul.f32 %v1624_v8, %v1624_v8  ;;  %v448_v28 = vmul.f32 %v447_v43, %v1614_v4  ;;  %v449_v29 = vmul.f32 %v447_v43, %v1624_v8  ;;  %v440_v30 = vadd.f32 %v439_v41, %v437_v22 }
  0xc9   : > { %v441_v31 = vadd.f32 %v439_v41, %v438_v23  ;;  %v453_v32 = vmul.f32 %v452_v44, %v1629_v10  ;;  %v454_v33 = vmul.f32 %v452_v44, %v1639_v13  ;;  %v458_v34 = vmul.f32 %v457_v45, %v1633_v11 }
  0xca   : > { %v459_v35 = vmul.f32 %v457_v45, %v1643_v15  ;;  %v463_v36 = vmul.f32 %v462_v46, %v1647_v16  ;;  %v464_v37 = vmul.f32 %v462_v46, %v1655_v18  ;;  %v445_v38 = vadd.f32 %v443_v24, %v440_v30 }
  0xcb   : > { %v446_v39 = vadd.f32 %v444_v25, %v441_v31  ;;  %v468_v40 = vmul.f32 %v467_v47, %v1651_v17  ;;  %v469_v41 = vmul.f32 %v467_v47, %v1659_v19  ;;  %v473_v42 = vmul.f32 %v472_v48, %v1663_v20 }
  0xcc   : > { %v474_v43 = vmul.f32 %v472_v48, %v1667_v21  ;;  %v509_v44 = vmul.f32 %v508_v50, %v1608_v2  ;;  %v510_v45 = vmul.f32 %v508_v50, %v1618_v6  ;;  %v450_v46 = vadd.f32 %v448_v28, %v445_v38 }
  0xcd   : > { %v451_v60 = vadd.f32 %v449_v29, %v446_v39  ;;  %v515_v1 = vmul.f32 %v514_v52, %v1611_v3  ;;  %v516_v22 = vmul.f32 %v514_v52, %v1621_v7  ;;  %v520_v48 = vmul.f32 %v519_v53, %v1614_v4 }
  0xce   : > { %v512_v47 = vadd.f32 %v511_v51, %v509_v44  ;;  %v513_v23 = vadd.f32 %v511_v51, %v510_v45  ;;  %v521_v50 = vmul.f32 %v519_v53, %v1624_v8  ;;  %v455_v24 = vadd.f32 %v453_v32, %v450_v46 }
  0xcf   : > { %v456_v25 = vadd.f32 %v454_v33, %v451_v60  ;;  %v478_v52 = vmul.f32 %v477_v49, %v1675_v26  ;;  %v479_v28 = vmul.f32 %v477_v49, %v1679_v27  ;;  %v525_v30 = vmul.f32 %v524_v54, %v1629_v10 }
  0xd0   : > { %v517_v29 = vadd.f32 %v515_v1, %v512_v47  ;;  %v518_v51 = vadd.f32 %v516_v22, %v513_v23  ;;  %v526_v53 = vmul.f32 %v524_v54, %v1639_v13  ;;  %v460_v31 = vadd.f32 %v458_v34, %v455_v24 }
  0xd1   : > { %v461_v32 = vadd.f32 %v459_v35, %v456_v25  ;;  %v530_v33 = vmul.f32 %v529_v55, %v1633_v11  ;;  %v531_v49 = vmul.f32 %v529_v55, %v1643_v15  ;;  %v535_v44 = vmul.f32 %v534_v56, %v1647_v16 }
  0xd2   : > { %v522_v38 = vadd.f32 %v520_v48, %v517_v29  ;;  %v523_v39 = vadd.f32 %v521_v50, %v518_v51  ;;  %v536_v45 = vmul.f32 %v534_v56, %v1655_v18  ;;  %v465_v54 = vadd.f32 %v463_v36, %v460_v31 }
  0xd3   : > { %v466_v34 = vadd.f32 %v464_v37, %v461_v32  ;;  %v540_v35 = vmul.f32 %v539_v57, %v1651_v17  ;;  %v541_v55 = vmul.f32 %v539_v57, %v1659_v19  ;;  %v545_v56 = vmul.f32 %v544_v58, %v1663_v20 }
  0xd4   : > { %v527_v46 = vadd.f32 %v525_v30, %v522_v38  ;;  %v528_v60 = vadd.f32 %v526_v53, %v523_v39  ;;  %v546_v1 = vmul.f32 %v544_v58, %v1667_v21  ;;  %v470_v36 = vadd.f32 %v468_v40, %v465_v54  ;;  %v482_v30 = vld [vmem:[%s1949_s5] sm:$0xff]  ;;  %v483_v53 = vld [vmem:[%s1949_s5 + $0x8] sm:$0xff] }
  0xd5   : > { %v471_v37 = vadd.f32 %v469_v41, %v466_v34  ;;  %v584_v57 = vmul.f32 %v583_v61, %v1608_v2  ;;  %v585_v22 = vmul.f32 %v583_v61, %v1618_v6  ;;  %v590_v58 = vmul.f32 %v589_v63, %v1611_v3 }
  0xd6   : > { %v532_v47 = vadd.f32 %v530_v33, %v527_v46  ;;  %v533_v23 = vadd.f32 %v531_v49, %v528_v60  ;;  %v591_v40 = vmul.f32 %v589_v63, %v1621_v7  ;;  %v475_v41 = vadd.f32 %v473_v42, %v470_v36 }
  0xd7   : > { %v476_v48 = vadd.f32 %v474_v43, %v471_v37  ;;  %v587_v50 = vadd.f32 %v586_v62, %v584_v57  ;;  %v588_v24 = vadd.f32 %v586_v62, %v585_v22  ;;  %v595_v61 = vmul.f32 %v594_v0, %v1614_v4 }
  0xd8   : > { %v537_v2 = vadd.f32 %v535_v44, %v532_v47  ;;  %v538_v25 = vadd.f32 %v536_v45, %v533_v23  ;;  %v596_v3 = vmul.f32 %v594_v0, %v1624_v8  ;;  %v550_v63 = vmul.f32 %v549_v59, %v1675_v26 }
  0xd9   : > { %v551_v6 = vmul.f32 %v549_v59, %v1679_v27  ;;  %v592_v7 = vadd.f32 %v590_v58, %v587_v50  ;;  %v593_v62 = vadd.f32 %v591_v40, %v588_v24  ;;  %v600_v4 = vmul.f32 %v599_v5, %v1629_v10  ;;  %v863_v58 = vld [vmem:[%s1949_s5 + $0x20] sm:$0xff]  ;;  %v864_v40 = vld [vmem:[%s1949_s5 + $0x28] sm:$0xff] }
  0xda   : > { %v542_v42 = vadd.f32 %v540_v35, %v537_v2  ;;  %v543_v43 = vadd.f32 %v541_v55, %v538_v25  ;;  %v601_v0 = vmul.f32 %v599_v5, %v1639_v13  ;;  %v480_v8 = vadd.f32 %v478_v52, %v475_v41  ;;  %v861_v5 = vld [vmem:[%s1949_s5 + $0x10] sm:$0xff]  ;;  %v862_v13 = vld [vmem:[%s1949_s5 + $0x18] sm:$0xff]  ;;  %v639_v25 = vld [vmem:[%s1950_s21 + $0x8] sm:$0xff] }
  0xdb   : > { %v481_v29 = vadd.f32 %v479_v28, %v476_v48  ;;  %v597_v51 = vadd.f32 %v595_v61, %v592_v7  ;;  %v598_v59 = vadd.f32 %v596_v3, %v593_v62  ;;  %v605_v10 = vmul.f32 %v604_v9, %v1633_v11 }
  0xdc   : > { %v547_v31 = vadd.f32 %v545_v56, %v542_v42  ;;  %v548_v32 = vadd.f32 %v546_v1, %v543_v43  ;;  %v606_v33 = vmul.f32 %v604_v9, %v1643_v15  ;;  %v619_v49 = vstv %s1745_s19 }
  0xdd   : > { %v602_v52 = vadd.f32 %v600_v4, %v597_v51  ;;  %v603_v28 = vadd.f32 %v601_v0, %v598_v59  ;;  %v624_v38 = vstv %s1747_s23  ;;  %v610_v45 = vmul.f32 %v609_v12, %v1647_v16 }
  0xde   : > { %v552_v39 = vadd.f32 %v550_v63, %v547_v31  ;;  %v553_v44 = vadd.f32 %v551_v6, %v548_v32  ;;  %v611_v54 = vmul.f32 %v609_v12, %v1655_v18  ;;  %v615_v11 = vmul.f32 %v614_v14, %v1651_v17 }
  0xdf   : > { %v607_v34 = vadd.f32 %v605_v10, %v602_v52  ;;  %v608_v35 = vadd.f32 %v606_v33, %v603_v28  ;;  %v616_v9 = vmul.f32 %v614_v14, %v1659_v19  ;;  %v484_v15 = vsub.f32 %v482_v30, %v480_v8 }
  0xe0   : > { %v485_v55 = vsub.f32 %v483_v53, %v481_v29  ;;  %v557_v46 = vsub.f32 %v861_v5, %v552_v39  ;;  %v558_v60 = vsub.f32 %v862_v13, %v553_v44  ;;  %v620_v16 = vmul.f32 %v619_v49, %v1663_v20 }
  0xe1   : > { %v612_v56 = vadd.f32 %v610_v45, %v607_v34  ;;  %v613_v1 = vadd.f32 %v611_v54, %v608_v35  ;;  %v621_v12 = vmul.f32 %v619_v49, %v1667_v21  ;;  %v625_v37 = vmul.f32 %v624_v38, %v1675_v26 }
  0xe2   : > { %v626_v17 = vmul.f32 %v624_v38, %v1679_v27  ;;  %v486_v57 = vmul.f32 %v484_v15, %v484_v15  ;;  %v487_v14 = vmul.f32 %v485_v55, %v485_v55  ;;  %v559_v19 = vmul.f32 %v557_v46, %v557_v46  ;;  %v638_v27 = vld [vmem:[%s1950_s21] sm:$0xff] }
  0xe3   : > { %v617_v18 = vadd.f32 %v615_v11, %v612_v56  ;;  %v618_v36 = vadd.f32 %v616_v9, %v613_v1  ;;  %v560_v22 = vmul.f32 %v558_v60, %v558_v60  ;;  %v656_v42 = vsel %vm642_vm4, %v638_v27, 0.0 }
  0xe4   : > { %v561_v48 = vadd.f32 %v559_v19, %v486_v57  ;;  %v657_v43 = vsel %vm642_vm4, %v639_v25, 0.0  ;;  %vm676_vm5 = vcmask (%p670_p4), 0   ;;  %v1215_v39 = vmov (%p670_p4), 0.0  }
  0xe5   : > { %v622_v47 = vadd.f32 %v620_v16, %v617_v18  ;;  %v623_v23 = vadd.f32 %v621_v12, %v618_v36  ;;  %v562_v21 = vadd.f32 %v560_v22, %v487_v14  ;;  %v658_v0 = vadd.f32 %v657_v43, %v656_v42  ;;  %677 = vst.msk [vmem:[#allocation10] sm:$0x1] (%p670_p4), %vm676_vm5, %v1215_v39 }
  0xe6   : > { %678 = vst.msk [vmem:[#allocation11] sm:$0x1] (%p670_p4), %vm676_vm5, %v1215_v39 }
  0xe7   : > { %v627_v41 = vadd.f32 %v625_v37, %v622_v47  ;;  %v628_v20 = vadd.f32 %v626_v17, %v623_v23 }
  0xe9   : > { %v632_v50 = vsub.f32 %v863_v58, %v627_v41  ;;  %v633_v24 = vsub.f32 %v864_v40, %v628_v20 }
  0xeb   : > { %v634_v2 = vmul.f32 %v632_v50, %v632_v50  ;;  %v635_v26 = vmul.f32 %v633_v24, %v633_v24 }
  0xed   : > { %v636_v61 = vadd.f32 %v634_v2, %v561_v48  ;;  %v637_v3 = vadd.f32 %v635_v26, %v562_v21 }
  0xef   : > { %v640_v63 = vmul.f32 %v638_v27, %v636_v61  ;;  %v641_v6 = vmul.f32 %v639_v25, %v637_v3 }
  0xf1   : > { %v643_v7 = vsel %vm642_vm4, %v640_v63, 0.0  ;;  %v644_v62 = vsel %vm642_vm4, %v641_v6, 0.0 }
  0xf2   : > { %v645_v4 = vadd.f32 %v644_v62, %v643_v7 }
  0xf4   : > { %646 = vadd.xlane.f32.xlu0 %v645_v4 }
  0xf8   : > { %659 = vadd.xlane.f32.xlu0 %v658_v0 }
 0x181   : > { %v647_v8 = vpop.xlane.xlu0 %646 }
 0x182   : > { %v648_v29 = vrot.slane %v647_v8, 4 }
 0x184   : > { %v649_v51 = vadd.f32 %v648_v29, %v647_v8 }
 0x185   : > { %v660_v59 = vpop.xlane.xlu0 %659 }
 0x186   : > { %v650_v30 = vrot.slane %v649_v51, 2  ;;  %v661_v53 = vrot.slane %v660_v59, 4 }
 0x188   : > { %v662_v31 = vadd.f32 %v661_v53, %v660_v59  ;;  %v651_v32 = vadd.f32 %v650_v30, %v649_v51 }
 0x18a   : > { %v663_v10 = vrot.slane %v662_v31, 2  ;;  %v652_v33 = vrot.slane %v651_v32, 1 }
 0x18c   : > { %v664_v5 = vadd.f32 %v663_v10, %v662_v31  ;;  %v653_v13 = vadd.f32 %v652_v33, %v651_v32 }
 0x18e   : > { %879 = vpush %v653_v13  ;;  %v665_v52 = vrot.slane %v664_v5, 1 }
 0x190   : > { %v666_v28 = vadd.f32 %v665_v52, %v664_v5 }
 0x192   : > { %881 = vpush %v666_v28 }
 0x1bf   : > { %s880_s25 = spop %879 }
 0x1c0   : > { %v655_v49 = vstv %s880_s25  ;;  %675 = sbr.rel (!%p670_p4) target bundleno = 455 (0x1c7), region = 56 }
 0x1c3   : > { %s882_s12 = spop %881 }
 0x1c4   : > { %s668_s26 = smul.f32 3.0, %s882_s12 }
 0x1c6   : > { %v669_v38 = vstv %s668_s26 }
 0x1c7 PF: > { %v679_v44 = vld [vmem:[#allocation10] sm:$0x1]  ;;  %s1952_s28 = sld [smem:[#allocation25_spill]]  ;;  %vm681_vm6 = vcmask 0   ;;  %v683_v45 = vld [vmem:[#allocation11] sm:$0x1] }
 0x1c8   : > { %v680_v54 = vadd.f32 %v679_v44, %v655_v49  ;;  %v684_v34 = vadd.f32 %v683_v45, %v669_v38  ;;  %s1216_s17 = smov [#allocation10]   ;;  %s1217_s29 = smov [#allocation11]  }
 0x1c9   : > { %s693_s16 = sshll.u32 %s1216_s17, 4  ;;  %s704_s0 = sshll.u32 %s1217_s29, 4  ;;  %s694_s16 = int_to_ptr.vmem [resolvable:$true] %s693_s16  ;;  %s705_s0 = int_to_ptr.vmem [resolvable:$true] %s704_s0 }
 0x1ca   : > { %682 = vst.msk [vmem:[#allocation10] sm:$0x1] %vm681_vm6, %v680_v54  ;;  %685 = vst.msk [vmem:[#allocation11] sm:$0x1] %vm681_vm6, %v684_v34  ;;  %s1089_s11 = scalar_lea.vmem %s694_s16, 16  ;;  %s1095_s8 = scalar_lea.vmem %s694_s16, 32 }
 0x1cb   : > { %p1090_p5 = scmp.ne.s32.totalorder %s694_s16, %s1089_s11  ;;  %p1096_p12 = scmp.lt.s32.totalorder %s694_s16, %s694_s16 }
 0x1cc   : > { %p1097_p2 = scmp.lt.s32.totalorder %s1095_s8, %s1089_s11 }
 0x1cd   : > { %p918_p13 = scmp.eq.s32.totalorder %s1952_s28, 1 }
 0x1ce   : > { %p1098_p3 = por %p1097_p2, %p1096_p12 }
 0x1cf   : > { %p1091_p7 = pnand %p1090_p5, %p918_p13 }
 0x1d1   : > { %p1092_p11 = pneg %p1091_p7 }
 0x1d3   : > { %p1099_p10 = pnand %p1098_p3, %p1092_p11 }
 0x1d5   : > { %1102 = shalt.err (!%p1099_p10)
}
 0x1d6   : > { %s1953_s10 = sld [smem:[#allocation35_spill]] }
 0x1dc   : > { %s1103_s13 = scalar_lea.hbm %s1953_s10, 16 }
 0x1dd   : > { %p1104_p0 = scmp.ne.s32.totalorder %s1953_s10, %s1103_s13  ;;  %p1109_p6 = scmp.lt.u32.totalorder %s1103_s13, %s1953_s10 }
 0x1df   : > { %p1105_p8 = pnand %p1104_p0, %p918_p13 }
 0x1e1   : > { %p1106_p9 = pneg %p1105_p8 }
 0x1e3   : > { %p1111_p1 = pnand %p1109_p6, %p1106_p9 }
 0x1e5   : > { %1114 = shalt.err (!%p1111_p1)
}
 0x1e6   : > { %894 = dma.vmem_to_hbm [thread:$0]  (%p918_p13), %s694_s16, 16, %s1953_s10, [#allocation4]  }
 0x1e7   : > { %s1115_s15 = scalar_lea.vmem %s705_s0, 16  ;;  %s1121_s30 = scalar_lea.vmem %s705_s0, 32 }
 0x1e8   : > { %p1116_p4 = scmp.ne.s32.totalorder %s705_s0, %s1115_s15  ;;  %p1122_p11 = scmp.lt.s32.totalorder %s705_s0, %s705_s0 }
 0x1e9   : > { %p1123_p12 = scmp.lt.s32.totalorder %s1121_s30, %s1115_s15 }
 0x1ea   : > { %p1117_p5 = pnand %p1116_p4, %p918_p13 }
 0x1eb   : > { %p1124_p2 = por %p1123_p12, %p1122_p11 }
 0x1ec   : > { %p1118_p7 = pneg %p1117_p5 }
 0x1ee   : > { %p1125_p3 = pnand %p1124_p2, %p1118_p7 }
 0x1f0   : > { %1128 = shalt.err (!%p1125_p3)
}
 0x1f1   : > { %s1954_s2 = sld [smem:[#allocation36_spill]] }
 0x1f7   : > { %s1129_s3 = scalar_lea.hbm %s1954_s2, 16 }
 0x1f8   : > { %p1130_p10 = scmp.ne.s32.totalorder %s1954_s2, %s1129_s3  ;;  %p1135_p9 = scmp.lt.u32.totalorder %s1129_s3, %s1954_s2 }
 0x1fa   : > { %p1131_p0 = pnand %p1130_p10, %p918_p13 }
 0x1fc   : > { %p1132_p8 = pneg %p1131_p0 }
 0x1fe   : > { %p1137_p6 = pnand %p1135_p9, %p1132_p8 }
 0x200   : > { %1140 = shalt.err (!%p1137_p6)
}
 0x201   : > { %896 = dma.vmem_to_hbm [thread:$0]  (%p918_p13), %s705_s0, 16, %s1954_s2, [#allocation12]  }
 0x202   : > { %1178 = dma.done.wait (%p918_p13), [#allocation4], 16  }
 0x203   : > { %1180 = vsyncadd (%p918_p13), [#allocation4], 4294967280 }
 0x204   : > { %1182 = dma.done.wait (%p918_p13), [#allocation12], 16  }
 0x205   : > { %1184 = vsyncadd (%p918_p13), [#allocation12], 4294967280 }
 0x206 PF: > { %s1955_s12 = sld [smem:[#allocation22_spill]]  ;;  %s1956_s18 = sld [smem:[#allocation18_spill]] }
 0x207   : > { %s1957_s19 = sld [smem:[#allocation19_spill]]  ;;  %s1958_s20 = sld [smem:[#allocation24_spill]] }
 0x208   : > { %s1959_s21 = sld [smem:[#allocation21_spill]]  ;;  %s1960_s22 = sld [smem:[#allocation23_spill]] }
 0x20c   : > { %s25_s23 = sadd.s32 1, %s1955_s12  }
 0x20d   : > { %p22_p1 = scmp.ge.s32.totalorder %s25_s23, 4  }
 0x20f   :  { %24 = sbr.rel (!%p22_p1) target bundleno = 16 (0x10), region = 118 }
 0x216   :  { %721 = vsyncpa [#allocation3], 1 }
 0x217   :  { %723 = vsyncpa [#allocation3 + $0x1], 1 }
 0x218   :  { %724 = vsyncpa [#allocation7], 1 }
 0x219   :  { %726 = vsyncpa [#allocation7 + $0x1], 1 }
 0x21a   :  { %727 = vsyncpa [#allocation4], 1 }
 0x21b   :  { %729 = vsyncpa [#allocation4 + $0x1], 1 }
 0x21c   :  { %730 = vsyncpa [#allocation12], 1 }
 0x21d   :  { %731 = vsyncpa [#allocation5], 1 }
 0x21e   :  { %733 = vsyncpa [#allocation5 + $0x1], 1 }

</bundles_post_ra>
